<compile_context>
chip_gen: v6e
topology: v6e:2x2x1
jax: 0.10.0
libtpu: 0.0.40
codegen_flags: <defaults>
</compile_context>

<pallas_src>
import functools
import math

import jax
import jax.numpy as jnp
from jax.experimental import pallas as pl
from jax.experimental.pallas import tpu as pltpu


_LANE = 128
_TARGET_BLOCK_BYTES = 4 << 20     # ~4 MiB per-array block (streaming sweet spot)
_VMEM_LIMIT_BYTES = 48 << 20      # 3 arrays x 2 buffers x 4 MiB + headroom; safe on v5e/v6e/v7x
_SLAB_WIDTH_CANDIDATES = (8192, 4096, 2048, 1024, 512, 256, 128)


def _make_kernel(neg_base: float, inv_e2m: float, m2e: float):
    """Build a kernel with the module parameters baked in as constants."""
    regen_enabled = m2e >= 0.0  # if m2e < 0 the PyTorch condition is always True

    def kernel(omega_ref, u_ref, out_ref):
        omega = omega_ref[...].astype(jnp.float32)
        u = u_ref[...].astype(jnp.float32)
        wp = omega * u                                   # VPU elementwise
        consume = neg_base - jnp.abs(wp) * inv_e2m       # -(base + |wp|/e2m)
        if regen_enabled:
            regen = neg_base - m2e * wp                  # -(base + m2e*wp)
            total = jnp.where(wp > 0.0, consume, regen)
        else:
            total = consume                              # folded at trace time
        out_ref[...] = total.astype(out_ref.dtype)

    return kernel


def _sublane_align(itemsize: int) -> int:
    # 8 for 4-byte dtypes, 16 for bf16/fp16, 32 for int8/fp8 (packed sublanes).
    return max(8, 32 // max(1, itemsize))


def _round_down(x: int, m: int) -> int:
    return max(m, (x // m) * m)


def _choose_layout(n: int, itemsize: int, align: int):
    """Pick (slab_shape, block_shape, grid) for a flat length-n elementwise op."""
    # Preferred path: reshape to a lane-dense 2D slab with a 128-multiple width.
    cols = None
    for w in _SLAB_WIDTH_CANDIDATES:
        if n % w == 0:
            cols = w
            break

    if cols is None:
        # Ragged total (not a multiple of 128): keep a single-row slab.
        # (1, bc) blocks pad the sublane dim to 8 internally -> budget /8.
        slab = (1, n)
        if n * itemsize * 8 <= _TARGET_BLOCK_BYTES:
            return slab, (1, n), (1, 1)              # whole array, one block
        bc = _round_down((_TARGET_BLOCK_BYTES // 8) // itemsize, _LANE)
        bc = min(bc, _round_down(n, _LANE))
        return slab, (1, bc), (1, pl.cdiv(n, bc))    # ragged last block is masked

    rows = n // cols
    slab = (rows, cols)
    row_bytes = cols * itemsize
    # Full-width (contiguous) blocks; tile rows to hit the per-array byte target.
    br_target = max(align, _TARGET_BLOCK_BYTES // row_bytes)
    if rows <= br_target:
        br = rows                                     # whole slab in one block
    else:
        br = _round_down(min(rows, br_target), align)
    grid = (pl.cdiv(rows, br), 1)
    return slab, (br, cols), grid


class ReactionWheelPowerPallas:
    """JAX/Pallas equivalent of the PyTorch ReactionWheelPower module."""

    def __init__(self, basePowerNeed=0.0, elecToMechEfficiency=1.0,
                 mechToElecEfficiency=-1.0):
        if elecToMechEfficiency <= 0.0:
            raise ValueError("elec_to_mech_eff must be a strictly positive value.")
        self.base_power_need = float(basePowerNeed)
        self.elec_to_mech_eff = float(elecToMechEfficiency)
        self.mech_to_elec_eff = float(mechToElecEfficiency)
        # Host-side precomputation: negated base and exact reciprocal.
        # NOTE: each distinct parameter triple retraces/recompiles (documented).
        self._kernel = _make_kernel(
            neg_base=-self.base_power_need,
            inv_e2m=1.0 / self.elec_to_mech_eff,
            m2e=self.mech_to_elec_eff,
        )

    @functools.partial(jax.jit, static_argnums=0)
    def __call__(self, omega: jnp.ndarray, u_current: jnp.ndarray) -> jnp.ndarray:
        assert omega.shape == u_current.shape, "omega / u_current shape mismatch"
        orig_shape = omega.shape
        out_dtype = jnp.result_type(omega.dtype, u_current.dtype)

        n = int(math.prod(orig_shape)) if orig_shape else 1
        itemsizes = (jnp.dtype(omega.dtype).itemsize,
                     jnp.dtype(u_current.dtype).itemsize,
                     jnp.dtype(out_dtype).itemsize)
        budget_itemsize = max(itemsizes)
        align = _sublane_align(min(itemsizes))

        slab, block, grid = _choose_layout(n, budget_itemsize, align)

        omega2 = omega.reshape(slab)       # metadata-only reshapes (elementwise op)
        u2 = u_current.reshape(slab)

        spec = pl.BlockSpec(block, lambda i, j: (i, j))
        out = pl.pallas_call(
            self._kernel,
            out_shape=jax.ShapeDtypeStruct(slab, out_dtype),
            grid=grid,
            in_specs=[spec, spec],
            out_specs=spec,
            compiler_params=pltpu.CompilerParams(
                dimension_semantics=("parallel", "parallel"),
                vmem_limit_bytes=_VMEM_LIMIT_BYTES,
            ),
            cost_estimate=pl.CostEstimate(
                flops=5 * n,
                transcendentals=0,
                bytes_accessed=3 * n * budget_itemsize,
            ),
        )(omega2, u2)
        return out.reshape(orig_shape)


def _reference(base, e2m, m2e, omega, u):
    omega = omega.astype(jnp.float32)
    u = u.astype(jnp.float32)
    wp = omega * u
    cond = jnp.logical_or(m2e < 0.0, wp > 0.0)
    total = jnp.where(cond, base + jnp.abs(wp) / e2m, base + m2e * wp)
    return -total


if __name__ == "__main__":
    key = jax.random.PRNGKey(0)
    k1, k2, k3, k4 = jax.random.split(key, 4)

    # Small but lane-dense shape: 16 wheels x 2048 samples.
    omega = jax.random.normal(k1, (16, 2048), dtype=jnp.float32) * 100.0     # rad/s
    u_current = jax.random.normal(k2, (16, 2048), dtype=jnp.float32) * 0.1   # N*m

    # Module params: base 5 W, 90% elec->mech, 50% mech->elec (regen enabled
    # so both branches are exercised).
    module = ReactionWheelPowerPallas(
        basePowerNeed=5.0, elecToMechEfficiency=0.9, mechToElecEfficiency=0.5
    )
    out = jax.block_until_ready(module(omega, u_current))
    ref = _reference(5.0, 0.9, 0.5, omega, u_current)
    assert jnp.allclose(out.astype(jnp.float32), ref, rtol=1e-5, atol=1e-4), \
        "mismatch vs reference"

    # Recovery-disabled (m2e < 0) fast path.
    module_no_regen = ReactionWheelPowerPallas(
        basePowerNeed=5.0, elecToMechEfficiency=0.9, mechToElecEfficiency=-1.0
    )
    out2 = jax.block_until_ready(module_no_regen(omega, u_current))
    ref2 = _reference(5.0, 0.9, -1.0, omega, u_current)
    assert jnp.allclose(out2.astype(jnp.float32), ref2, rtol=1e-5, atol=1e-4), \
        "mismatch vs reference (no-regen path)"

    # Odd, non-128-multiple shape exercises the ragged fallback layout.
    omega3 = jax.random.normal(k3, (7, 300), dtype=jnp.float32) * 50.0
    u3 = jax.random.normal(k4, (7, 300), dtype=jnp.float32) * 0.05
    out3 = jax.block_until_ready(module(omega3, u3))
    ref3 = _reference(5.0, 0.9, 0.5, omega3, u3)
    assert jnp.allclose(out3.astype(jnp.float32), ref3, rtol=1e-5, atol=1e-4), \
        "mismatch vs reference (ragged shape)"

    print("KERNEL_OK")
</pallas_src>

<mosaic_0001>
module attributes {stable_mosaic.version = 11 : i64} {
  func.func @kernel(%arg0: i32, %arg1: i32, %arg2: memref<4x8192xf32, #tpu.memory_space<vmem>>, %arg3: memref<4x8192xf32, #tpu.memory_space<vmem>>, %arg4: memref<4x8192xf32, #tpu.memory_space<vmem>>) attributes {dimension_semantics = [#tpu.dimension_semantics<parallel>, #tpu.dimension_semantics<parallel>], iteration_bounds = array<i64: 1, 1>, scalar_prefetch = 0 : i64, scratch_operands = 0 : i64, tpu.core_type = #tpu.core_type<tc>, window_params = [{transform_indices = @transform_0, window_bounds = array<i64: 4, 8192>}, {transform_indices = @transform_1, window_bounds = array<i64: 4, 8192>}, {transform_indices = @transform_2, window_bounds = array<i64: 4, 8192>}]} {
    %c0 = arith.constant 0 : index
    %c0_0 = arith.constant 0 : index
    %0 = vector.load %arg2[%c0, %c0_0] : memref<4x8192xf32, #tpu.memory_space<vmem>>, vector<4x8192xf32>
    %c0_1 = arith.constant 0 : index
    %c0_2 = arith.constant 0 : index
    %1 = vector.load %arg3[%c0_1, %c0_2] : memref<4x8192xf32, #tpu.memory_space<vmem>>, vector<4x8192xf32>
    %2 = arith.mulf %0, %1 : vector<4x8192xf32>
    %3 = math.absf %2 : vector<4x8192xf32>
    %cst = arith.constant 1.11111116 : f32
    %4 = vector.broadcast %cst : f32 to vector<4x8192xf32>
    %5 = arith.mulf %3, %4 : vector<4x8192xf32>
    %cst_3 = arith.constant -5.000000e+00 : f32
    %6 = vector.broadcast %cst_3 : f32 to vector<4x8192xf32>
    %7 = arith.subf %6, %5 : vector<4x8192xf32>
    %cst_4 = arith.constant 5.000000e-01 : f32
    %8 = vector.broadcast %cst_4 : f32 to vector<4x8192xf32>
    %9 = arith.mulf %8, %2 : vector<4x8192xf32>
    %cst_5 = arith.constant -5.000000e+00 : f32
    %10 = vector.broadcast %cst_5 : f32 to vector<4x8192xf32>
    %11 = arith.subf %10, %9 : vector<4x8192xf32>
    %cst_6 = arith.constant 0.000000e+00 : f32
    %12 = vector.broadcast %cst_6 : f32 to vector<4x8192xf32>
    %13 = arith.cmpf ogt, %2, %12 : vector<4x8192xf32>
    %14 = arith.select %13, %7, %11 : vector<4x8192xi1>, vector<4x8192xf32>
    %c0_7 = arith.constant 0 : index
    %c0_8 = arith.constant 0 : index
    %15 = vector.load %arg4[%c0_7, %c0_8] : memref<4x8192xf32, #tpu.memory_space<vmem>>, vector<4x8192xf32>
    tpu.vector_store %arg4[%c0_7, %c0_8], %14 {strides = array<i32>} : memref<4x8192xf32, #tpu.memory_space<vmem>>, vector<4x8192xf32>,
    return
  }
  func.func @transform_0(%arg0: i32, %arg1: i32) -> (i32, i32) {
    %c0_i32 = arith.constant 0 : i32
    return %arg0, %arg1 : i32, i32
  }
  func.func @transform_1(%arg0: i32, %arg1: i32) -> (i32, i32) {
    %c0_i32 = arith.constant 0 : i32
    return %arg0, %arg1 : i32, i32
  }
  func.func @transform_2(%arg0: i32, %arg1: i32) -> (i32, i32) {
    %c0_i32 = arith.constant 0 : i32
    return %arg0, %arg1 : i32, i32
  }
}

</mosaic_0001>

<bundles_post_ra>
// kernel: a_call__.1
= control target key start
LH: loop header
LB: loop body
LE: loop exit
PB: predicated region body
PF: predicated region fallthrough
CT: control target
= control target key end

     0   :  { %s696_s0 = inlined_call_operand.vmem [shape: f32[4,8192], index: 0, kind: input, shape index: {}]   ;;  %s697_s1 = inlined_call_operand.vmem [shape: f32[4,8192], index: 1, kind: input, shape index: {}]   ;;  %s698_s2 = inlined_call_operand.vmem [shape: f32[4,8192], index: 2, kind: output, shape index: {}]  }
   0x1   :  { %v11_v0 = vld [vmem:[%s696_s0] sm:$0xff]  ;;  %v12_v2 = vld [vmem:[%s696_s0 + $0x8] sm:$0xff]  ;;  %v13_v5 = vld [vmem:[%s696_s0 + $0x10] sm:$0xff] }
   0x2   :  { %v43_v1 = vld [vmem:[%s697_s1] sm:$0xff]  ;;  %v44_v4 = vld [vmem:[%s697_s1 + $0x8] sm:$0xff]  ;;  %v45_v6 = vld [vmem:[%s697_s1 + $0x10] sm:$0xff] }
   0x3   :  { %v75_v3 = vmul.f32 %v43_v1, %v11_v0  ;;  %v76_v7 = vmul.f32 %v44_v4, %v12_v2  ;;  %v77_v8 = vmul.f32 %v45_v6, %v13_v5  ;;  %v14_v9 = vld [vmem:[%s696_s0 + $0x18] sm:$0xff]  ;;  %v15_v14 = vld [vmem:[%s696_s0 + $0x20] sm:$0xff]  ;;  %v16_v19 = vld [vmem:[%s696_s0 + $0x28] sm:$0xff] }
   0x4   :  { %v46_v10 = vld [vmem:[%s697_s1 + $0x18] sm:$0xff]  ;;  %v47_v15 = vld [vmem:[%s697_s1 + $0x20] sm:$0xff]  ;;  %v48_v23 = vld [vmem:[%s697_s1 + $0x28] sm:$0xff] }
   0x5   :  { %v107_v11 = vand.u32 2147483647, %v75_v3  ;;  %v203_v12 = vmul.f32 0.5, %v75_v3  ;;  %vm267_vm0 = vcmp.gt.f32.partialorder %v75_v3, 0.0  ;;  %v78_v13 = vmul.f32 %v46_v10, %v14_v9  ;;  %v17_v31 = vld [vmem:[%s696_s0 + $0x30] sm:$0xff]  ;;  %v18_v41 = vld [vmem:[%s696_s0 + $0x38] sm:$0xff] }
   0x6   :  { %v108_v16 = vand.u32 2147483647, %v76_v7  ;;  %v204_v17 = vmul.f32 0.5, %v76_v7  ;;  %vm268_vm1 = vcmp.gt.f32.partialorder %v76_v7, 0.0  ;;  %v109_v18 = vand.u32 2147483647, %v77_v8 }
   0x7   :  { %v139_v20 = vmul.f32 1.1111112, %v107_v11  ;;  %v235_v21 = vsub.f32 -5.0, %v203_v12  ;;  %v205_v22 = vmul.f32 0.5, %v77_v8  ;;  %vm269_vm2 = vcmp.gt.f32.partialorder %v77_v8, 0.0  ;;  %v49_v36 = vld [vmem:[%s697_s1 + $0x30] sm:$0xff] }
   0x8   :  { %v140_v24 = vmul.f32 1.1111112, %v108_v16  ;;  %v236_v25 = vsub.f32 -5.0, %v204_v17  ;;  %v141_v26 = vmul.f32 1.1111112, %v109_v18  ;;  %v206_v27 = vmul.f32 0.5, %v78_v13 }
   0x9   :  { %v171_v28 = vsub.f32 -5.0, %v139_v20  ;;  %v237_v29 = vsub.f32 -5.0, %v205_v22  ;;  %v110_v30 = vand.u32 2147483647, %v78_v13  ;;  %vm270_vm3 = vcmp.gt.f32.partialorder %v78_v13, 0.0  ;;  %v50_v42 = vld [vmem:[%s697_s1 + $0x38] sm:$0xff] }
   0xa   :  { %v172_v32 = vsub.f32 -5.0, %v140_v24  ;;  %v173_v33 = vsub.f32 -5.0, %v141_v26  ;;  %v238_v34 = vsub.f32 -5.0, %v206_v27  ;;  %v79_v35 = vmul.f32 %v47_v15, %v15_v14  ;;  %v19_v47 = vld [vmem:[%s696_s0 + $0x40] sm:$0xff]  ;;  %v20_v49 = vld [vmem:[%s696_s0 + $0x48] sm:$0xff]  ;;  %v21_v8 = vld [vmem:[%s696_s0 + $0x50] sm:$0xff] }
   0xb   :  { %v299_v37 = vsel %vm267_vm0, %v171_v28, %v235_v21  ;;  %v142_v38 = vmul.f32 1.1111112, %v110_v30  ;;  %v80_v39 = vmul.f32 %v48_v23, %v16_v19  ;;  %v81_v40 = vmul.f32 %v49_v36, %v17_v31  ;;  %v51_v48 = vld [vmem:[%s697_s1 + $0x40] sm:$0xff]  ;;  %v52_v53 = vld [vmem:[%s697_s1 + $0x48] sm:$0xff]  ;;  %v53_v9 = vld [vmem:[%s697_s1 + $0x50] sm:$0xff] }
   0xc   :  { %331 = vst [vmem:[%s698_s2] sm:$0xff] %v299_v37  ;;  %v300_v43 = vsel %vm268_vm1, %v172_v32, %v236_v25  ;;  %v301_v44 = vsel %vm269_vm2, %v173_v33, %v237_v29  ;;  %v111_v45 = vand.u32 2147483647, %v79_v35  ;;  %v207_v46 = vmul.f32 0.5, %v79_v35  ;;  %v22_v13 = vld [vmem:[%s696_s0 + $0x58] sm:$0xff]  ;;  %v23_v18 = vld [vmem:[%s696_s0 + $0x60] sm:$0xff]  ;;  %v24_v31 = vld [vmem:[%s696_s0 + $0x68] sm:$0xff] }
   0xd   :  { %332 = vst [vmem:[%s698_s2 + $0x8] sm:$0xff] %v300_v43  ;;  %333 = vst [vmem:[%s698_s2 + $0x10] sm:$0xff] %v301_v44  ;;  %v174_v50 = vsub.f32 -5.0, %v142_v38  ;;  %vm271_vm4 = vcmp.gt.f32.partialorder %v79_v35, 0.0  ;;  %v112_v51 = vand.u32 2147483647, %v80_v39  ;;  %v82_v63 = vmul.f32 %v50_v42, %v18_v41 }
   0xe   :  { %v208_v52 = vmul.f32 0.5, %v80_v39  ;;  %v143_v54 = vmul.f32 1.1111112, %v111_v45  ;;  %v239_v55 = vsub.f32 -5.0, %v207_v46  ;;  %vm272_vm5 = vcmp.gt.f32.partialorder %v80_v39, 0.0  ;;  %v54_v14 = vld [vmem:[%s697_s1 + $0x58] sm:$0xff] }
   0xf   :  { %v113_v56 = vand.u32 2147483647, %v81_v40  ;;  %v302_v57 = vsel %vm270_vm3, %v174_v50, %v238_v34  ;;  %v144_v58 = vmul.f32 1.1111112, %v112_v51  ;;  %v209_v60 = vmul.f32 0.5, %v81_v40  ;;  %v55_v19 = vld [vmem:[%s697_s1 + $0x60] sm:$0xff] }
  0x10   :  { %v240_v59 = vsub.f32 -5.0, %v208_v52  ;;  %334 = vst [vmem:[%s698_s2 + $0x18] sm:$0xff] %v302_v57  ;;  %v175_v61 = vsub.f32 -5.0, %v143_v54  ;;  %vm273_vm6 = vcmp.gt.f32.partialorder %v81_v40, 0.0  ;;  %v83_v2 = vmul.f32 %v51_v48, %v19_v47  ;;  %v56_v32 = vld [vmem:[%s697_s1 + $0x68] sm:$0xff]  ;;  %v25_v36 = vld [vmem:[%s696_s0 + $0x70] sm:$0xff] }
  0x11   :  { %v145_v62 = vmul.f32 1.1111112, %v113_v56  ;;  %v176_v0 = vsub.f32 -5.0, %v144_v58  ;;  %v241_v1 = vsub.f32 -5.0, %v209_v60  ;;  %v84_v3 = vmul.f32 %v52_v53, %v20_v49  ;;  %v57_v37 = vld [vmem:[%s697_s1 + $0x70] sm:$0xff]  ;;  %v26_v42 = vld [vmem:[%s696_s0 + $0x78] sm:$0xff] }
  0x12   :  { %v303_v4 = vsel %vm271_vm4, %v175_v61, %v239_v55  ;;  %v114_v6 = vand.u32 2147483647, %v82_v63  ;;  %v210_v7 = vmul.f32 0.5, %v82_v63  ;;  %vm274_vm7 = vcmp.gt.f32.partialorder %v82_v63, 0.0  ;;  %v58_v43 = vld [vmem:[%s697_s1 + $0x78] sm:$0xff]  ;;  %v59_v63 = vld [vmem:[%s697_s1 + $0x80] sm:$0xff] }
  0x13   :  { %v177_v5 = vsub.f32 -5.0, %v145_v62  ;;  %335 = vst [vmem:[%s698_s2 + $0x20] sm:$0xff] %v303_v4  ;;  %v304_v10 = vsel %vm272_vm5, %v176_v0, %v240_v59  ;;  %v115_v11 = vand.u32 2147483647, %v83_v2  ;;  %v211_v12 = vmul.f32 0.5, %v83_v2  ;;  %v27_v62 = vld [vmem:[%s696_s0 + $0x80] sm:$0xff] }
  0x14   :  { %336 = vst [vmem:[%s698_s2 + $0x28] sm:$0xff] %v304_v10  ;;  %v146_v16 = vmul.f32 1.1111112, %v114_v6  ;;  %v242_v17 = vsub.f32 -5.0, %v210_v7  ;;  %vm275_vm8 = vcmp.gt.f32.partialorder %v83_v2, 0.0  ;;  %v212_v23 = vmul.f32 0.5, %v84_v3 }
  0x15   :  { %v305_v15 = vsel %vm273_vm6, %v177_v5, %v241_v1  ;;  %v147_v20 = vmul.f32 1.1111112, %v115_v11  ;;  %v243_v21 = vsub.f32 -5.0, %v211_v12  ;;  %v116_v22 = vand.u32 2147483647, %v84_v3  ;;  %v60_v4 = vld [vmem:[%s697_s1 + $0x88] sm:$0xff] }
  0x16   :  { %337 = vst [vmem:[%s698_s2 + $0x30] sm:$0xff] %v305_v15  ;;  %v178_v24 = vsub.f32 -5.0, %v146_v16  ;;  %vm276_vm9 = vcmp.gt.f32.partialorder %v84_v3, 0.0  ;;  %v85_v25 = vmul.f32 %v53_v9, %v21_v8  ;;  %v86_v26 = vmul.f32 %v54_v14, %v22_v13  ;;  %v28_v3 = vld [vmem:[%s696_s0 + $0x88] sm:$0xff]  ;;  %v29_v8 = vld [vmem:[%s696_s0 + $0x90] sm:$0xff] }
  0x17   :  { %v179_v27 = vsub.f32 -5.0, %v147_v20  ;;  %v148_v28 = vmul.f32 1.1111112, %v116_v22  ;;  %v244_v29 = vsub.f32 -5.0, %v212_v23  ;;  %v87_v30 = vmul.f32 %v55_v19, %v23_v18  ;;  %v61_v9 = vld [vmem:[%s697_s1 + $0x90] sm:$0xff]  ;;  %v62_v22 = vld [vmem:[%s697_s1 + $0x98] sm:$0xff] }
  0x18   :  { %v306_v33 = vsel %vm274_vm7, %v178_v24, %v242_v17  ;;  %v117_v34 = vand.u32 2147483647, %v85_v25  ;;  %v213_v35 = vmul.f32 0.5, %v85_v25  ;;  %vm277_vm10 = vcmp.gt.f32.partialorder %v85_v25, 0.0 }
  0x19   :  { %338 = vst [vmem:[%s698_s2 + $0x38] sm:$0xff] %v306_v33  ;;  %v307_v38 = vsel %vm275_vm8, %v179_v27, %v243_v21  ;;  %v180_v39 = vsub.f32 -5.0, %v148_v28  ;;  %v118_v40 = vand.u32 2147483647, %v86_v26  ;;  %v214_v41 = vmul.f32 0.5, %v86_v26  ;;  %v30_v21 = vld [vmem:[%s696_s0 + $0x98] sm:$0xff] }
  0x1a   :  { %339 = vst [vmem:[%s698_s2 + $0x40] sm:$0xff] %v307_v38  ;;  %v149_v44 = vmul.f32 1.1111112, %v117_v34  ;;  %v245_v45 = vsub.f32 -5.0, %v213_v35  ;;  %vm278_vm11 = vcmp.gt.f32.partialorder %v86_v26, 0.0  ;;  %v215_v50 = vmul.f32 0.5, %v87_v30 }
  0x1b   :  { %v119_v46 = vand.u32 2147483647, %v87_v30  ;;  %v308_v47 = vsel %vm276_vm9, %v180_v39, %v244_v29  ;;  %v150_v48 = vmul.f32 1.1111112, %v118_v40  ;;  %v246_v49 = vsub.f32 -5.0, %v214_v41  ;;  %v31_v26 = vld [vmem:[%s696_s0 + $0xa0] sm:$0xff] }
  0x1c   :  { %340 = vst [vmem:[%s698_s2 + $0x48] sm:$0xff] %v308_v47  ;;  %v181_v51 = vsub.f32 -5.0, %v149_v44  ;;  %vm279_vm12 = vcmp.gt.f32.partialorder %v87_v30, 0.0  ;;  %v88_v53 = vmul.f32 %v56_v32, %v24_v31  ;;  %v247_v55 = vsub.f32 -5.0, %v215_v50  ;;  %v63_v27 = vld [vmem:[%s697_s1 + $0xa0] sm:$0xff]  ;;  %v32_v32 = vld [vmem:[%s696_s0 + $0xa8] sm:$0xff] }
  0x1d   :  { %v151_v52 = vmul.f32 1.1111112, %v119_v46  ;;  %v182_v54 = vsub.f32 -5.0, %v150_v48  ;;  %v89_v56 = vmul.f32 %v57_v37, %v25_v36  ;;  %v90_v57 = vmul.f32 %v58_v43, %v26_v42  ;;  %v64_v33 = vld [vmem:[%s697_s1 + $0xa8] sm:$0xff] }
  0x1e   :  { %v309_v58 = vsel %vm277_vm10, %v181_v51, %v245_v45  ;;  %v120_v60 = vand.u32 2147483647, %v88_v53  ;;  %v216_v61 = vmul.f32 0.5, %v88_v53  ;;  %vm280_vm13 = vcmp.gt.f32.partialorder %v88_v53, 0.0  ;;  %v65_v53 = vld [vmem:[%s697_s1 + $0xb0] sm:$0xff] }
  0x1f   :  { %v183_v59 = vsub.f32 -5.0, %v151_v52  ;;  %341 = vst [vmem:[%s698_s2 + $0x50] sm:$0xff] %v309_v58  ;;  %v310_v0 = vsel %vm278_vm11, %v182_v54, %v246_v49  ;;  %v121_v1 = vand.u32 2147483647, %v89_v56  ;;  %v217_v2 = vmul.f32 0.5, %v89_v56  ;;  %v33_v52 = vld [vmem:[%s696_s0 + $0xb0] sm:$0xff] }
  0x20   :  { %342 = vst [vmem:[%s698_s2 + $0x58] sm:$0xff] %v310_v0  ;;  %v152_v6 = vmul.f32 1.1111112, %v120_v60  ;;  %v248_v7 = vsub.f32 -5.0, %v216_v61  ;;  %vm281_vm14 = vcmp.gt.f32.partialorder %v89_v56, 0.0  ;;  %v218_v13 = vmul.f32 0.5, %v90_v57 }
  0x21   :  { %v311_v5 = vsel %vm279_vm12, %v183_v59, %v247_v55  ;;  %v153_v10 = vmul.f32 1.1111112, %v121_v1  ;;  %v249_v11 = vsub.f32 -5.0, %v217_v2  ;;  %v122_v12 = vand.u32 2147483647, %v90_v57  ;;  %v66_v58 = vld [vmem:[%s697_s1 + $0xb8] sm:$0xff] }
  0x22   :  { %343 = vst [vmem:[%s698_s2 + $0x60] sm:$0xff] %v311_v5  ;;  %v184_v14 = vsub.f32 -5.0, %v152_v6  ;;  %vm282_vm15 = vcmp.gt.f32.partialorder %v90_v57, 0.0  ;;  %v91_v15 = vmul.f32 %v59_v63, %v27_v62  ;;  %v92_v16 = vmul.f32 %v60_v4, %v28_v3  ;;  %v34_v57 = vld [vmem:[%s696_s0 + $0xb8] sm:$0xff]  ;;  %v35_v62 = vld [vmem:[%s696_s0 + $0xc0] sm:$0xff] }
  0x23   :  { %v185_v17 = vsub.f32 -5.0, %v153_v10  ;;  %v154_v18 = vmul.f32 1.1111112, %v122_v12  ;;  %v250_v19 = vsub.f32 -5.0, %v218_v13  ;;  %v93_v20 = vmul.f32 %v61_v9, %v29_v8  ;;  %v67_v63 = vld [vmem:[%s697_s1 + $0xc0] sm:$0xff]  ;;  %v68_v12 = vld [vmem:[%s697_s1 + $0xc8] sm:$0xff] }
  0x24   :  { %v312_v23 = vsel %vm280_vm13, %v184_v14, %v248_v7  ;;  %v123_v24 = vand.u32 2147483647, %v91_v15  ;;  %v219_v25 = vmul.f32 0.5, %v91_v15  ;;  %vm283_vm0 = vcmp.gt.f32.partialorder %v91_v15, 0.0 }
  0x25   :  { %344 = vst [vmem:[%s698_s2 + $0x68] sm:$0xff] %v312_v23  ;;  %v313_v28 = vsel %vm281_vm14, %v185_v17, %v249_v11  ;;  %v186_v29 = vsub.f32 -5.0, %v154_v18  ;;  %v124_v30 = vand.u32 2147483647, %v92_v16  ;;  %v220_v31 = vmul.f32 0.5, %v92_v16  ;;  %v36_v11 = vld [vmem:[%s696_s0 + $0xc8] sm:$0xff] }
  0x26   :  { %345 = vst [vmem:[%s698_s2 + $0x70] sm:$0xff] %v313_v28  ;;  %v155_v34 = vmul.f32 1.1111112, %v123_v24  ;;  %v251_v35 = vsub.f32 -5.0, %v219_v25  ;;  %vm284_vm1 = vcmp.gt.f32.partialorder %v92_v16, 0.0  ;;  %v221_v40 = vmul.f32 0.5, %v93_v20 }
  0x27   :  { %v125_v36 = vand.u32 2147483647, %v93_v20  ;;  %v314_v37 = vsel %vm282_vm15, %v186_v29, %v250_v19  ;;  %v156_v38 = vmul.f32 1.1111112, %v124_v30  ;;  %v252_v39 = vsub.f32 -5.0, %v220_v31  ;;  %v37_v16 = vld [vmem:[%s696_s0 + $0xd0] sm:$0xff] }
  0x28   :  { %346 = vst [vmem:[%s698_s2 + $0x78] sm:$0xff] %v314_v37  ;;  %v187_v41 = vsub.f32 -5.0, %v155_v34  ;;  %vm285_vm2 = vcmp.gt.f32.partialorder %v93_v20, 0.0  ;;  %v94_v43 = vmul.f32 %v62_v22, %v30_v21  ;;  %v253_v45 = vsub.f32 -5.0, %v221_v40  ;;  %v69_v17 = vld [vmem:[%s697_s1 + $0xd0] sm:$0xff]  ;;  %v38_v22 = vld [vmem:[%s696_s0 + $0xd8] sm:$0xff] }
  0x29   :  { %v157_v42 = vmul.f32 1.1111112, %v125_v36  ;;  %v188_v44 = vsub.f32 -5.0, %v156_v38  ;;  %v95_v46 = vmul.f32 %v63_v27, %v31_v26  ;;  %v96_v47 = vmul.f32 %v64_v33, %v32_v32  ;;  %v70_v23 = vld [vmem:[%s697_s1 + $0xd8] sm:$0xff] }
  0x2a   :  { %v315_v48 = vsel %vm283_vm0, %v187_v41, %v251_v35  ;;  %v126_v50 = vand.u32 2147483647, %v94_v43  ;;  %v222_v51 = vmul.f32 0.5, %v94_v43  ;;  %vm286_vm3 = vcmp.gt.f32.partialorder %v94_v43, 0.0 }
  0x2b   :  { %v189_v49 = vsub.f32 -5.0, %v157_v42  ;;  %347 = vst [vmem:[%s698_s2 + $0x80] sm:$0xff] %v315_v48  ;;  %v316_v54 = vsel %vm284_vm1, %v188_v44, %v252_v39  ;;  %v127_v55 = vand.u32 2147483647, %v95_v46  ;;  %v223_v56 = vmul.f32 0.5, %v95_v46  ;;  %v39_v42 = vld [vmem:[%s696_s0 + $0xe0] sm:$0xff] }
  0x2c   :  { %348 = vst [vmem:[%s698_s2 + $0x88] sm:$0xff] %v316_v54  ;;  %v158_v60 = vmul.f32 1.1111112, %v126_v50  ;;  %v254_v61 = vsub.f32 -5.0, %v222_v51  ;;  %vm287_vm4 = vcmp.gt.f32.partialorder %v95_v46, 0.0  ;;  %v224_v3 = vmul.f32 0.5, %v96_v47 }
  0x2d   :  { %v317_v59 = vsel %vm285_vm2, %v189_v49, %v253_v45  ;;  %v159_v0 = vmul.f32 1.1111112, %v127_v55  ;;  %v255_v1 = vsub.f32 -5.0, %v223_v56  ;;  %v128_v2 = vand.u32 2147483647, %v96_v47  ;;  %v71_v46 = vld [vmem:[%s697_s1 + $0xe0] sm:$0xff] }
  0x2e   :  { %349 = vst [vmem:[%s698_s2 + $0x90] sm:$0xff] %v317_v59  ;;  %v190_v4 = vsub.f32 -5.0, %v158_v60  ;;  %vm288_vm5 = vcmp.gt.f32.partialorder %v96_v47, 0.0  ;;  %v97_v5 = vmul.f32 %v65_v53, %v33_v52  ;;  %v98_v6 = vmul.f32 %v66_v58, %v34_v57  ;;  %v40_v47 = vld [vmem:[%s696_s0 + $0xe8] sm:$0xff]  ;;  %v41_v52 = vld [vmem:[%s696_s0 + $0xf0] sm:$0xff] }
  0x2f   :  { %v191_v7 = vsub.f32 -5.0, %v159_v0  ;;  %v160_v8 = vmul.f32 1.1111112, %v128_v2  ;;  %v256_v9 = vsub.f32 -5.0, %v224_v3  ;;  %v99_v10 = vmul.f32 %v67_v63, %v35_v62  ;;  %v72_v48 = vld [vmem:[%s697_s1 + $0xe8] sm:$0xff]  ;;  %v73_v53 = vld [vmem:[%s697_s1 + $0xf0] sm:$0xff] }
  0x30   :  { %v318_v13 = vsel %vm286_vm3, %v190_v4, %v254_v61  ;;  %v129_v14 = vand.u32 2147483647, %v97_v5  ;;  %v225_v15 = vmul.f32 0.5, %v97_v5  ;;  %vm289_vm6 = vcmp.gt.f32.partialorder %v97_v5, 0.0 }
  0x31   :  { %350 = vst [vmem:[%s698_s2 + $0x98] sm:$0xff] %v318_v13  ;;  %v319_v18 = vsel %vm287_vm4, %v191_v7, %v255_v1  ;;  %v192_v19 = vsub.f32 -5.0, %v160_v8  ;;  %v130_v20 = vand.u32 2147483647, %v98_v6  ;;  %v226_v21 = vmul.f32 0.5, %v98_v6  ;;  %v42_v8 = vld [vmem:[%s696_s0 + $0xf8] sm:$0xff] }
  0x32   :  { %351 = vst [vmem:[%s698_s2 + $0xa0] sm:$0xff] %v319_v18  ;;  %v161_v24 = vmul.f32 1.1111112, %v129_v14  ;;  %v257_v25 = vsub.f32 -5.0, %v225_v15  ;;  %vm290_vm7 = vcmp.gt.f32.partialorder %v98_v6, 0.0  ;;  %v227_v30 = vmul.f32 0.5, %v99_v10 }
  0x33   :  { %v131_v26 = vand.u32 2147483647, %v99_v10  ;;  %v320_v27 = vsel %vm288_vm5, %v192_v19, %v256_v9  ;;  %v162_v28 = vmul.f32 1.1111112, %v130_v20  ;;  %v258_v29 = vsub.f32 -5.0, %v226_v21  ;;  %v74_v9 = vld [vmem:[%s697_s1 + $0xf8] sm:$0xff] }
  0x34   :  { %352 = vst [vmem:[%s698_s2 + $0xa8] sm:$0xff] %v320_v27  ;;  %v193_v31 = vsub.f32 -5.0, %v161_v24  ;;  %vm291_vm8 = vcmp.gt.f32.partialorder %v99_v10, 0.0  ;;  %v100_v33 = vmul.f32 %v68_v12, %v36_v11  ;;  %v259_v35 = vsub.f32 -5.0, %v227_v30 }
  0x35   :  { %v163_v32 = vmul.f32 1.1111112, %v131_v26  ;;  %v194_v34 = vsub.f32 -5.0, %v162_v28  ;;  %v101_v36 = vmul.f32 %v69_v17, %v37_v16  ;;  %v102_v37 = vmul.f32 %v70_v23, %v38_v22 }
  0x36   :  { %v321_v38 = vsel %vm289_vm6, %v193_v31, %v257_v25  ;;  %v132_v40 = vand.u32 2147483647, %v100_v33  ;;  %v228_v41 = vmul.f32 0.5, %v100_v33  ;;  %vm292_vm9 = vcmp.gt.f32.partialorder %v100_v33, 0.0 }
  0x37   :  { %v195_v39 = vsub.f32 -5.0, %v163_v32  ;;  %353 = vst [vmem:[%s698_s2 + $0xb0] sm:$0xff] %v321_v38  ;;  %v322_v43 = vsel %vm290_vm7, %v194_v34, %v258_v29  ;;  %v133_v44 = vand.u32 2147483647, %v101_v36  ;;  %v229_v45 = vmul.f32 0.5, %v101_v36 }
  0x38   :  { %354 = vst [vmem:[%s698_s2 + $0xb8] sm:$0xff] %v322_v43  ;;  %v164_v50 = vmul.f32 1.1111112, %v132_v40  ;;  %v260_v51 = vsub.f32 -5.0, %v228_v41  ;;  %v134_v56 = vand.u32 2147483647, %v102_v37  ;;  %v103_v59 = vmul.f32 %v71_v46, %v39_v42 }
  0x39   :  { %v323_v49 = vsel %vm291_vm8, %v195_v39, %v259_v35  ;;  %v165_v54 = vmul.f32 1.1111112, %v133_v44  ;;  %v261_v55 = vsub.f32 -5.0, %v229_v45  ;;  %v230_v57 = vmul.f32 0.5, %v102_v37 }
  0x3a   :  { %355 = vst [vmem:[%s698_s2 + $0xc0] sm:$0xff] %v323_v49  ;;  %v196_v58 = vsub.f32 -5.0, %v164_v50  ;;  %vm293_vm10 = vcmp.gt.f32.partialorder %v101_v36, 0.0  ;;  %v104_v60 = vmul.f32 %v72_v48, %v40_v47  ;;  %v166_v62 = vmul.f32 1.1111112, %v134_v56 }
  0x3b   :  { %v197_v61 = vsub.f32 -5.0, %v165_v54  ;;  %v262_v63 = vsub.f32 -5.0, %v230_v57  ;;  %v105_v0 = vmul.f32 %v73_v53, %v41_v52  ;;  %vm294_vm11 = vcmp.gt.f32.partialorder %v102_v37, 0.0 }
  0x3c   :  { %v324_v1 = vsel %vm292_vm9, %v196_v58, %v260_v51  ;;  %v135_v2 = vand.u32 2147483647, %v103_v59  ;;  %v231_v3 = vmul.f32 0.5, %v103_v59  ;;  %v198_v5 = vsub.f32 -5.0, %v166_v62 }
  0x3d   :  { %356 = vst [vmem:[%s698_s2 + $0xc8] sm:$0xff] %v324_v1  ;;  %v325_v4 = vsel %vm293_vm10, %v197_v61, %v261_v55  ;;  %v136_v6 = vand.u32 2147483647, %v104_v60  ;;  %v232_v7 = vmul.f32 0.5, %v104_v60  ;;  %vm295_vm12 = vcmp.gt.f32.partialorder %v103_v59, 0.0 }
  0x3e   :  { %357 = vst [vmem:[%s698_s2 + $0xd0] sm:$0xff] %v325_v4  ;;  %v167_v10 = vmul.f32 1.1111112, %v135_v2  ;;  %v263_v11 = vsub.f32 -5.0, %v231_v3  ;;  %v137_v12 = vand.u32 2147483647, %v105_v0  ;;  %v326_v13 = vsel %vm294_vm11, %v198_v5, %v262_v63 }
  0x3f   :  { %v168_v14 = vmul.f32 1.1111112, %v136_v6  ;;  %v264_v15 = vsub.f32 -5.0, %v232_v7  ;;  %v233_v16 = vmul.f32 0.5, %v105_v0  ;;  %358 = vst [vmem:[%s698_s2 + $0xd8] sm:$0xff] %v326_v13  ;;  %vm296_vm13 = vcmp.gt.f32.partialorder %v104_v60, 0.0 }
  0x40   :  { %v199_v17 = vsub.f32 -5.0, %v167_v10  ;;  %v169_v18 = vmul.f32 1.1111112, %v137_v12  ;;  %v106_v19 = vmul.f32 %v74_v9, %v42_v8  ;;  %vm297_vm14 = vcmp.gt.f32.partialorder %v105_v0, 0.0 }
  0x41   :  { %v200_v20 = vsub.f32 -5.0, %v168_v14  ;;  %v265_v21 = vsub.f32 -5.0, %v233_v16 }
  0x42   :  { %v327_v22 = vsel %vm295_vm12, %v199_v17, %v263_v11  ;;  %v201_v23 = vsub.f32 -5.0, %v169_v18  ;;  %v138_v24 = vand.u32 2147483647, %v106_v19  ;;  %v234_v25 = vmul.f32 0.5, %v106_v19 }
  0x43   :  { %359 = vst [vmem:[%s698_s2 + $0xe0] sm:$0xff] %v327_v22  ;;  %v328_v26 = vsel %vm296_vm13, %v200_v20, %v264_v15  ;;  %vm298_vm15 = vcmp.gt.f32.partialorder %v106_v19, 0.0 }
  0x44   :  { %360 = vst [vmem:[%s698_s2 + $0xe8] sm:$0xff] %v328_v26  ;;  %v329_v27 = vsel %vm297_vm14, %v201_v23, %v265_v21  ;;  %v170_v28 = vmul.f32 1.1111112, %v138_v24  ;;  %v266_v29 = vsub.f32 -5.0, %v234_v25 }
  0x45   :  { %361 = vst [vmem:[%s698_s2 + $0xf0] sm:$0xff] %v329_v27 }
  0x46   :  { %v202_v30 = vsub.f32 -5.0, %v170_v28 }
  0x48   :  { %v330_v31 = vsel %vm298_vm15, %v202_v30, %v266_v29 }
  0x49   :  { %362 = vst [vmem:[%s698_s2 + $0xf8] sm:$0xff] %v330_v31 }

</bundles_post_ra>
